<compile_context>
chip_gen: v7x
topology: tpu7x:2x2x1
jax: 0.10.0
libtpu: 0.0.40
codegen_flags: <defaults>
</compile_context>

<pallas_src>
import jax
import jax.numpy as jnp
from jax.experimental import pallas as pl
from jax.experimental.pallas import tpu as pltpu


def _round_up(n, m):
    return ((n + m - 1) // m) * m


def mlp_kernel(x_ref, w1_ref, b1_ref, w2_ref, b2_ref, o_ref):
    # x_ref:  [F, TB]   (batch on lanes)
    # w1_ref: [H, F]    (BN scale folded in)
    # b1_ref: [H, 1]    (bias + BN shift folded)
    # w2_ref: [H, 1]
    # b2_ref: [1, 1]
    # o_ref:  [1, TB]
    h = jnp.dot(w1_ref[...], x_ref[...], preferred_element_type=jnp.float32)  # [H, TB]
    h = h + b1_ref[...]
    # ELU(alpha=1.0): one EUP transcendental per element (expm1 may lower to a
    # composite); clamping the exp argument keeps padded / large-positive columns
    # finite so the select never sees inf.
    h = jnp.where(h > 0.0, h, jnp.exp(jnp.minimum(h, 0.0)) - 1.0)
    # Dropout: identity in eval mode.
    # Output layer (H -> 1) as a sublane reduction; rides the XLU slot and keeps
    # the result lane-dense.
    o_ref[...] = jnp.sum(w2_ref[...] * h, axis=0, keepdims=True) + b2_ref[...]


def mlp_classifier_forward(x, params, tile_b=32768):
    """Fused MLP forward. x: [B, 5] float32 -> [B] float32 logits.

    Returns a flat [B] vector (lane-dense); reshape to [B, 1] at the consumer
    boundary if the 2-D PyTorch output shape is needed.
    """
    w1, b1, bn_gamma, bn_beta, bn_mean, bn_var, bn_eps, w2, b2, weight_constraint = (
        params["w1"], params["b1"], params["bn_gamma"], params["bn_beta"],
        params["bn_mean"], params["bn_var"], params["bn_eps"],
        params["w2"], params["b2"], params["weight_constraint"],
    )

    # --- parameter preprocessing (hoisted out of the kernel; fuses under jit) ---
    # max-norm constraint: norm(2, dim=0) -> per-input-feature column norms [1, 5]
    norm = jnp.sqrt(jnp.sum(w1 * w1, axis=0, keepdims=True))
    norm = jnp.maximum(norm, weight_constraint / 2.0)
    desired = jnp.minimum(norm, weight_constraint)
    w1c = w1 * (desired / norm)                                  # [H, 5]

    # fold BatchNorm (eval) + bias into W1 / a single bias
    inv_std = 1.0 / jnp.sqrt(bn_var + bn_eps)                    # [H]
    bn_scale = bn_gamma * inv_std                                # [H]
    bn_shift = bn_beta - bn_mean * bn_gamma * inv_std            # [H]
    w1f = (w1c * bn_scale[:, None]).astype(jnp.float32)          # [H, 5]
    b1f = (b1 * bn_scale + bn_shift).astype(jnp.float32)[:, None]  # [H, 1]
    w2f = w2.reshape(-1, 1).astype(jnp.float32)                  # [H, 1]
    b2f = b2.reshape(1, 1).astype(jnp.float32)                   # [1, 1]

    H, F = w1f.shape
    B = x.shape[0]

    # --- batch-on-lanes layout + tiling ---
    B_lane = _round_up(max(B, 1), 128)                 # lane-aligned batch extent
    # round requested tile to the lane quantum: a (5, tb) block needs tb % 128 == 0
    tb = _round_up(max(min(int(tile_b), B_lane), 1), 128)
    # cap the tile so the grid has >=4 steps when possible, so the "parallel" batch
    # axis can be sharded across v7x's two TensorCores (harmless on v5e/v6e).
    tb = min(tb, max(128, _round_up(pl.cdiv(B_lane, 4), 128)))
    B_pad = _round_up(B_lane, tb)

    # Batch-on-lanes view of x. allow_input_fusion below lets XLA fuse this
    # transpose/pad into the pallas_call's input DMA rather than writing an
    # extra sublane-padded copy of x to HBM first.
    xT = jnp.pad(x.astype(jnp.float32).T, ((0, 0), (0, B_pad - B)))   # [F, B_pad]

    grid = (B_pad // tb,)
    out = pl.pallas_call(
        mlp_kernel,
        out_shape=jax.ShapeDtypeStruct((1, B_pad), jnp.float32),
        grid=grid,
        in_specs=[
            pl.BlockSpec((F, tb), lambda i: (0, i)),   # x tile, streamed over batch
            pl.BlockSpec((H, F), lambda i: (0, 0)),    # weights stay VMEM-resident
            pl.BlockSpec((H, 1), lambda i: (0, 0)),
            pl.BlockSpec((H, 1), lambda i: (0, 0)),
            pl.BlockSpec((1, 1), lambda i: (0, 0)),
        ],
        out_specs=pl.BlockSpec((1, tb), lambda i: (0, i)),
        compiler_params=pltpu.CompilerParams(
            dimension_semantics=("parallel",),                    # megacore on v7x
            allow_input_fusion=[True, False, False, False, False],
        ),
    )(xT, w1f, b1f, w2f, b2f)

    # Flat [B] logits; slicing the lane-dense [1, B_pad] row avoids a lane-padded
    # [B, 1] HBM write-back pass.
    return out[0, :B]


def make_params(key, n_neurons=16, weight_constraint=1.0):
    k1, k2, k3, k4 = jax.random.split(key, 4)
    in_features = 5
    # kaiming_normal_ (fan_in, gain=sqrt(2)) on the two Linear weights
    w1 = jax.random.normal(k1, (n_neurons, in_features), jnp.float32) * jnp.sqrt(2.0 / in_features)
    w2 = jax.random.normal(k2, (1, n_neurons), jnp.float32) * jnp.sqrt(2.0 / n_neurons)
    # nn.Linear default bias init: U(-1/sqrt(fan_in), 1/sqrt(fan_in))
    b1 = jax.random.uniform(k3, (n_neurons,), jnp.float32,
                            -1.0 / jnp.sqrt(in_features), 1.0 / jnp.sqrt(in_features))
    b2 = jax.random.uniform(k4, (1,), jnp.float32,
                            -1.0 / jnp.sqrt(n_neurons), 1.0 / jnp.sqrt(n_neurons))
    return {
        "w1": w1, "b1": b1,
        "bn_gamma": jnp.ones((n_neurons,), jnp.float32),
        "bn_beta": jnp.zeros((n_neurons,), jnp.float32),
        "bn_mean": jnp.zeros((n_neurons,), jnp.float32),
        "bn_var": jnp.ones((n_neurons,), jnp.float32),
        "bn_eps": 1e-5,
        "w2": w2, "b2": b2,
        "weight_constraint": weight_constraint,
    }


def reference_forward(x, params):
    """Pure-JAX reference for correctness checking (eval-mode semantics)."""
    w1, b1 = params["w1"], params["b1"]
    norm = jnp.sqrt(jnp.sum(w1 * w1, axis=0, keepdims=True))
    norm = jnp.maximum(norm, params["weight_constraint"] / 2.0)
    desired = jnp.minimum(norm, params["weight_constraint"])
    w1c = w1 * (desired / norm)
    h = x @ w1c.T + b1
    inv_std = 1.0 / jnp.sqrt(params["bn_var"] + params["bn_eps"])
    h = (h - params["bn_mean"]) * inv_std * params["bn_gamma"] + params["bn_beta"]
    h = jnp.where(h > 0.0, h, jnp.expm1(h))
    return h @ params["w2"].T + params["b2"]


if __name__ == "__main__":
    key = jax.random.PRNGKey(0)
    kx, kx2, kx3, kp = jax.random.split(key, 4)
    params = make_params(kp, n_neurons=16, weight_constraint=1.0)

    fwd = jax.jit(mlp_classifier_forward, static_argnames=("tile_b",))

    # Small batch (exercises the pad-to-128 / single-tile path).
    B, F = 8, 5
    x = jax.random.normal(kx, (B, F), jnp.float32)
    out = jax.block_until_ready(fwd(x, params))
    ref = reference_forward(x, params)
    assert out.shape == (B,)
    assert jnp.allclose(out, ref[:, 0], atol=1e-4, rtol=1e-5), (out, ref)

    # Non-multiple-of-tile batch, non-128-multiple tile_b (exercises rounding guard
    # + multi-step grid + padding).
    B2 = 300
    x2 = jax.random.normal(kx2, (B2, F), jnp.float32)
    out2 = jax.block_until_ready(fwd(x2, params, tile_b=1000))
    ref2 = reference_forward(x2, params)
    assert out2.shape == (B2,)
    assert jnp.allclose(out2, ref2[:, 0], atol=1e-4, rtol=1e-5), (out2, ref2)

    # Larger batch with the default tile: megacore cap forces a >=4-step grid.
    B3 = 2048
    x3 = jax.random.normal(kx3, (B3, F), jnp.float32)
    out3 = jax.block_until_ready(fwd(x3, params))
    ref3 = reference_forward(x3, params)
    assert out3.shape == (B3,)
    assert jnp.allclose(out3, ref3[:, 0], atol=1e-4, rtol=1e-5), (out3, ref3)

    print("KERNEL_OK")
</pallas_src>

<mosaic_0001>
module attributes {stable_mosaic.version = 11 : i64} {
  func.func @mlp_kernel(%arg0: i32, %arg1: memref<5x128xf32, #tpu.memory_space<vmem>>, %arg2: memref<16x5xf32, #tpu.memory_space<vmem>>, %arg3: memref<16x1xf32, #tpu.memory_space<vmem>>, %arg4: memref<16x1xf32, #tpu.memory_space<vmem>>, %arg5: memref<1x1xf32, #tpu.memory_space<vmem>>, %arg6: memref<1x128xf32, #tpu.memory_space<vmem>>) attributes {dimension_semantics = [#tpu.dimension_semantics<parallel>], iteration_bounds = array<i64: 1>, scalar_prefetch = 0 : i64, scratch_operands = 0 : i64, tpu.core_type = #tpu.core_type<tc>, window_params = [{transform_indices = @transform_0, window_bounds = array<i64: 5, 128>}, {pipeline_mode = #tpu.pipeline_mode<synchronous>, transform_indices = @transform_1, window_bounds = array<i64: 16, 5>}, {pipeline_mode = #tpu.pipeline_mode<synchronous>, transform_indices = @transform_2, window_bounds = array<i64: 16, 1>}, {pipeline_mode = #tpu.pipeline_mode<synchronous>, transform_indices = @transform_3, window_bounds = array<i64: 16, 1>}, {pipeline_mode = #tpu.pipeline_mode<synchronous>, transform_indices = @transform_4, window_bounds = array<i64: 1, 1>}, {transform_indices = @transform_5, window_bounds = array<i64: 1, 128>}]} {
    %c0 = arith.constant 0 : index
    %c0_0 = arith.constant 0 : index
    %0 = vector.load %arg2[%c0, %c0_0] : memref<16x5xf32, #tpu.memory_space<vmem>>, vector<16x5xf32>
    %c0_1 = arith.constant 0 : index
    %c0_2 = arith.constant 0 : index
    %1 = vector.load %arg1[%c0_1, %c0_2] : memref<5x128xf32, #tpu.memory_space<vmem>>, vector<5x128xf32>
    %cst = arith.constant dense<0.000000e+00> : vector<16x128xf32>
    %2 = tpu.matmul %0, %1, %cst {dimension_numbers = #tpu.dot_dimension_numbers<[1], [0], [0], [1], [0, 0, 1, 1], [], []>} : vector<16x5xf32>, vector<5x128xf32>, vector<16x128xf32> -> vector<16x128xf32>
    %c0_3 = arith.constant 0 : index
    %c0_4 = arith.constant 0 : index
    %3 = vector.load %arg3[%c0_3, %c0_4] : memref<16x1xf32, #tpu.memory_space<vmem>>, vector<16x1xf32>
    %4 = vector.broadcast %3 : vector<16x1xf32> to vector<16x128xf32>
    %5 = arith.addf %2, %4 : vector<16x128xf32>
    %cst_5 = arith.constant 0.000000e+00 : f32
    %6 = vector.broadcast %cst_5 : f32 to vector<16x128xf32>
    %7 = arith.cmpf ogt, %5, %6 : vector<16x128xf32>
    %cst_6 = arith.constant 0.000000e+00 : f32
    %8 = vector.broadcast %cst_6 : f32 to vector<16x128xf32>
    %9 = arith.minimumf %5, %8 : vector<16x128xf32>
    %10 = math.exp %9 : vector<16x128xf32>
    %cst_7 = arith.constant 1.000000e+00 : f32
    %11 = vector.broadcast %cst_7 : f32 to vector<16x128xf32>
    %12 = arith.subf %10, %11 : vector<16x128xf32>
    %13 = arith.select %7, %5, %12 : vector<16x128xi1>, vector<16x128xf32>
    %c0_8 = arith.constant 0 : index
    %c0_9 = arith.constant 0 : index
    %14 = vector.load %arg4[%c0_8, %c0_9] : memref<16x1xf32, #tpu.memory_space<vmem>>, vector<16x1xf32>
    %15 = vector.broadcast %14 : vector<16x1xf32> to vector<16x128xf32>
    %16 = arith.mulf %15, %13 : vector<16x128xf32>
    %cst_10 = arith.constant dense<0.000000e+00> : vector<128xf32>
    %17 = vector.multi_reduction <add>, %16, %cst_10 [0] : vector<16x128xf32> to vector<128xf32>
    %18 = vector.shape_cast %17 : vector<128xf32> to vector<1x128xf32>
    %c0_11 = arith.constant 0 : index
    %c0_12 = arith.constant 0 : index
    %19 = vector.load %arg5[%c0_11, %c0_12] : memref<1x1xf32, #tpu.memory_space<vmem>>, vector<1x1xf32>
    %20 = vector.broadcast %19 : vector<1x1xf32> to vector<1x128xf32>
    %21 = arith.addf %18, %20 : vector<1x128xf32>
    %c0_13 = arith.constant 0 : index
    %c0_14 = arith.constant 0 : index
    %22 = vector.load %arg6[%c0_13, %c0_14] : memref<1x128xf32, #tpu.memory_space<vmem>>, vector<1x128xf32>
    tpu.vector_store %arg6[%c0_13, %c0_14], %21 {strides = array<i32>} : memref<1x128xf32, #tpu.memory_space<vmem>>, vector<1x128xf32>,
    return
  }
  func.func @transform_0(%arg0: i32) -> (i32, i32) {
    %c0_i32 = arith.constant 0 : i32
    %c0_i32_0 = arith.constant 0 : i32
    return %c0_i32, %arg0 : i32, i32
  }
  func.func @transform_1(%arg0: i32) -> (i32, i32) {
    %c0_i32 = arith.constant 0 : i32
    %c0_i32_0 = arith.constant 0 : i32
    %c0_i32_1 = arith.constant 0 : i32
    return %c0_i32, %c0_i32_0 : i32, i32
  }
  func.func @transform_2(%arg0: i32) -> (i32, i32) {
    %c0_i32 = arith.constant 0 : i32
    %c0_i32_0 = arith.constant 0 : i32
    %c0_i32_1 = arith.constant 0 : i32
    return %c0_i32, %c0_i32_0 : i32, i32
  }
  func.func @transform_3(%arg0: i32) -> (i32, i32) {
    %c0_i32 = arith.constant 0 : i32
    %c0_i32_0 = arith.constant 0 : i32
    %c0_i32_1 = arith.constant 0 : i32
    return %c0_i32, %c0_i32_0 : i32, i32
  }
  func.func @transform_4(%arg0: i32) -> (i32, i32) {
    %c0_i32 = arith.constant 0 : i32
    %c0_i32_0 = arith.constant 0 : i32
    %c0_i32_1 = arith.constant 0 : i32
    return %c0_i32, %c0_i32_0 : i32, i32
  }
  func.func @transform_5(%arg0: i32) -> (i32, i32) {
    %c0_i32 = arith.constant 0 : i32
    %c0_i32_0 = arith.constant 0 : i32
    return %c0_i32, %arg0 : i32, i32
  }
}

</mosaic_0001>

<bundles_post_ra>
// kernel: mlp_classifier_forward.2
= control target key start
LH: loop header
LB: loop body
LE: loop exit
PB: predicated region body
PF: predicated region fallthrough
CT: control target
= control target key end

     0   :  { %s275_s0 = inlined_call_operand.vmem [shape: f32[16,5], index: 0, kind: input, shape index: {}]   ;;  %s276_s1 = inlined_call_operand.vmem [shape: f32[16,1], index: 1, kind: input, shape index: {}]   ;;  %s277_s2 = inlined_call_operand.vmem [shape: f32[16,1], index: 2, kind: input, shape index: {}]   ;;  %s278_s3 = inlined_call_operand.<no memory space> [shape: f32[1,1], index: 3, kind: input, shape index: {}]   ;;  %s279_s4 = inlined_call_operand.vmem [shape: f32[5,8], index: 4, kind: input, shape index: {}]   ;;  %s280_s5 = inlined_call_operand.<no memory space> [shape: f32[], index: 5, kind: input, shape index: {}]   ;;  %s281_s6 = inlined_call_operand.vmem [shape: f32[1,128], index: 6, kind: output, shape index: {}]  }
   0x1   :  { %v11_v0 = vstv %s280_s5  ;;  %v12_v1 = vstv %s278_s3 }
   0x2   :  { %13 = vst [vmem:[#allocation7] sm:$0x1] %v12_v1 }
   0x3   :  { %v25_v2 = vlaneseq  ;;  %v37_v3 = vld [vmem:[%s275_s0] sm:$0xff]  ;;  %vm52_vm0 = vcmask 39936   ;;  %v207_v8 = vmov 0   ;;  %v41_v10 = vld [vmem:[%s276_s1 + $0x8] sm:$0xff]  ;;  %vm59_vm3 = vcmask 1044480  }
   0x4   :  { %197 = vmatprep.mubr.msk.f32.mxu0 %vm52_vm0, %v37_v3  ;;  %v40_v4 = vld [vmem:[%s276_s1] sm:$0xff]  ;;  %201 = vset.pattern.permute.xlu0 %v207_v8  ;;  %v151_v11 = vld [vmem:[%s277_s2 + $0x8] sm:$0xff] }
   0x5   :  { %v24_v5 = vld [vmem:[%s279_s4] sm:$0x1f]  ;;  %v26_v6 = vshrl.u32 %v25_v2, 7  ;;  %v31_v7 = vand.u32 127, %v25_v2  ;;  %202 = vset.pattern.permute.xlu1 %v207_v8  ;;  %44 = vperm.xlu0 %201, %v40_v4   ;;  %v38_v16 = vld [vmem:[%s275_s0 + $0x8] sm:$0xff] }
   0x6   :  { %v150_v9 = vld [vmem:[%s277_s2] sm:$0xff] }
   0x7   :  { %154 = vperm.xlu1 %202, %v150_v9   ;;  %vm28_vm1 = vcmp.lt.s32.totalorder %v26_v6, 5  ;;  %vm33_vm2 = vcmp.lt.s32.totalorder %v31_v7, 8  ;;  %v179_v41 = vsub.s32 0, %v26_v6 }
   0x8   :  { %v29_v12 = vsel %vm28_vm1, %v24_v5, %v11_v0 }
   0x9   :  { %v34_v13 = vsel %vm33_vm2, %v29_v12, %v11_v0  ;;  %49 = vperm.xlu0 %201, %v41_v10   ;;  %v171_v14 = vld [vmem:[#allocation7] sm:$0x1] }
   0xa   :  { %36 = vst [vmem:[#allocation8] sm:$0xff] %v34_v13 }
   0xb   :  { %159 = vperm.xlu1 %202, %v151_v11  }
   0xd   :  { %174 = vperm.xlu0 %201, %v171_v14  }
  0x11   :  { %v39_v15 = vld [vmem:[#allocation8] sm:$0x1f] }
  0x12   :  { %195 = vmatprep.subr.msk.mxu0 %vm59_vm3, %v39_v15 }
  0x13   :  { %196 = vmatpush3.msk.msra.mxu0 %vm59_vm3, %v39_v15 }
  0x14   :  { %198 = vmatmul.mubr.msk.f32.vlgmr.msra.gmra.mrb[0].mxu0 %vm52_vm0, %v38_v16 }
  0x84   :  { %v45_v17 = vpop.permute.xlu0 %44 }
  0x86   :  { %v155_v27 = vpop.permute.xlu1 %154 }
  0x88   :  { %v50_v18 = vpop.permute.xlu0 %49 }
  0x8a   :  { %v160_v32 = vpop.permute.xlu1 %159 }
  0x8c   :  { %v175_v43 = vpop.permute.xlu0 %174 }
  0x8d   :  { %v180_v45 = vrot.slane %v175_v43, %v179_v41 }
  0xe7   :  { %v199_v19 = vpop.f32.mrb[0].mxu0 }
  0xe8   :  { %v135_v20 = vadd.f32 %v199_v19, %v50_v18  ;;  %v129_v21 = vpop.f32.mrb[1].mxu0 }
  0xe9   :  { %v130_v22 = vadd.f32 %v129_v21, %v45_v17 }
  0xea   :  { %v141_v23 = vmin.f32 %v135_v20, 0.0  ;;  %vm139_vm4 = vcmp.gt.f32.partialorder %v135_v20, 0.0 }
  0xeb   :  { %v140_v24 = vmin.f32 %v130_v22, 0.0  ;;  %vm138_vm5 = vcmp.gt.f32.partialorder %v130_v22, 0.0 }
  0xec   :  { %v144_v25 = vmul.f32 1.442695, %v141_v23 }
  0xed   :  { %v142_v26 = vmul.f32 1.442695, %v140_v24 }
  0xee   :  { %203 = vpow2.f32 %v144_v25 }
  0xef   :  { %205 = vpow2.f32 %v142_v26 }
  0xf8   :  { %v204_v28 = vpop.eup %203 }
  0xf9   :  { %v206_v29 = vpop.eup %205  ;;  %v191_v30 = vadd.f32 -1.0, %v204_v28 }
  0xfa   :  { %v190_v31 = vadd.f32 -1.0, %v206_v29 }
  0xfb   :  { %v149_v33 = vsel %vm139_vm4, %v135_v20, %v191_v30 }
  0xfc   :  { %v148_v34 = vsel %vm138_vm5, %v130_v22, %v190_v31  ;;  %v163_v35 = vmul.f32 %v160_v32, %v149_v33 }
  0xfd   :  { %v162_v36 = vmul.f32 %v155_v27, %v148_v34 }
  0xff   :  { %v164_v37 = vadd.f32 %v163_v35, %v162_v36 }
 0x101   :  { %v165_v38 = vrot.slane %v164_v37, 4 }
 0x103   :  { %v166_v39 = vadd.f32 %v165_v38, %v164_v37 }
 0x105   :  { %v167_v40 = vrot.slane %v166_v39, 2 }
 0x107   :  { %v168_v42 = vadd.f32 %v167_v40, %v166_v39 }
 0x109   :  { %v169_v44 = vrot.slane %v168_v42, 1 }
 0x10b   :  { %v170_v46 = vadd.f32 %v169_v44, %v168_v42 }
 0x10d   :  { %v181_v47 = vadd.f32 %v180_v45, %v170_v46 }
 0x10f   :  { %182 = vst [vmem:[%s281_s6] sm:$0x1] %v181_v47 }

</bundles_post_ra>
